<compile_context>
chip_gen: v5e
topology: v5e:2x2
jax: 0.10.0
libtpu: 0.0.40
codegen_flags: <defaults>
</compile_context>

<pallas_src>
import functools

import jax
import jax.numpy as jnp
from jax.experimental import pallas as pl
from jax.experimental.pallas import tpu as pltpu

_LANE_PAD = 128  # lane padding appended to each flattened image (keeps blocks
                 # lane-aligned; must be >= (KH-1)*W + (KW-1))


def _conv3x3_relu_kernel(x_ref, w_ref, b_ref, o_ref, *, width, kh, kw, cin):
    # x_ref : (NB, Cin, H*W + 128)   pre-padded, channel-major, spatial on lanes
    # w_ref : (Cout, KH*KW*Cin)      weights, column order (kh, kw, cin)
    # b_ref : (Cout, H*W)            bias pre-broadcast along lanes
    # o_ref : (NB, Cout, H*W)        conv+ReLU at flat position oh*W+ow; only
    #                                the valid region is kept by the wrapper.
    nb = x_ref.shape[0]
    hw = o_ref.shape[-1]

    for n in range(nb):
        acc = b_ref[...]                                   # (Cout, HW) f32 init
        for t in range(kh * kw):
            dh, dw = divmod(t, kw)
            off = dh * width + dw
            tap = x_ref[n, :, off:off + hw]                # (Cin, HW) lane shift
            acc = acc + jnp.dot(
                w_ref[:, t * cin:(t + 1) * cin], tap,      # (Cout,Cin)@(Cin,HW)
                preferred_element_type=jnp.float32)
        o_ref[n] = jnp.maximum(acc, 0.0).astype(o_ref.dtype)


def _images_per_step(n_images):
    """Images per grid step.

    Aim for >= 2 grid steps (software pipelining everywhere, both TensorCores
    on v7x), cap the per-step working set / trace size, and only return
    divisors of N so no trailing images are dropped.
    """
    if n_images <= 1:
        return 1
    cap = 32                                   # ~per-step VMEM & unroll cap
    limit = max(1, min(cap, n_images // 2))    # guarantees >= 2 grid steps
    nb = 1
    for d in range(1, limit + 1):
        if n_images % d == 0:
            nb = d
    return nb


@jax.jit
def c1_forward(img_nchw, weight_oihw, bias):
    """C1 forward: Conv2d(3, 8, kernel_size=3, stride=1, padding=0) + ReLU.

    img_nchw    : (N, 3, H, W) float32 (PyTorch layout)
    weight_oihw : (8, 3, 3, 3) float32 (PyTorch Conv2d layout)
    bias        : (8,)         float32
    returns     : (N, 8, H-2, W-2) float32 (PyTorch layout)
    """
    N, Cin, H, W = img_nchw.shape
    Cout, _, KH, KW = weight_oihw.shape
    Hout, Wout = H - KH + 1, W - KW + 1
    HW = H * W
    assert (KH - 1) * W + (KW - 1) <= _LANE_PAD, "image width too large for lane pad"

    # Channel-major with spatial flattened onto the lane axis (free bitcast),
    # zero-padded ONCE in the wrapper so the kernel never builds pad buffers.
    x_flat = img_nchw.reshape(N, Cin, HW)
    x_pad = jnp.pad(x_flat, ((0, 0), (0, 0), (0, _LANE_PAD)))
    # (Cout, KH*KW*Cin) with column order (kh, kw, cin) matching the kernel.
    w_mat = jnp.transpose(weight_oihw, (0, 2, 3, 1)).reshape(Cout, KH * KW * Cin)
    # Bias pre-broadcast to a lane-dense (Cout, HW) accumulator seed.
    b_bcast = jnp.broadcast_to(bias.reshape(Cout, 1), (Cout, HW)).astype(jnp.float32)

    nb = _images_per_step(N)                   # images per grid step (divides N)
    grid = (N // nb,)

    kernel = functools.partial(
        _conv3x3_relu_kernel, width=W, kh=KH, kw=KW, cin=Cin)

    out_flat = pl.pallas_call(
        kernel,
        out_shape=jax.ShapeDtypeStruct((N, Cout, HW), jnp.float32),
        grid_spec=pltpu.PrefetchScalarGridSpec(
            num_scalar_prefetch=0,
            grid=grid,
            in_specs=[
                pl.BlockSpec((nb, Cin, HW + _LANE_PAD), lambda g: (g, 0, 0)),
                pl.BlockSpec((Cout, KH * KW * Cin), lambda g: (0, 0)),
                pl.BlockSpec((Cout, HW), lambda g: (0, 0)),
            ],
            out_specs=pl.BlockSpec((nb, Cout, HW), lambda g: (g, 0, 0)),
        ),
        compiler_params=pltpu.CompilerParams(
            dimension_semantics=("parallel",)),
    )(x_pad, w_mat, b_bcast)

    # Output is already NCHW (channel-major, flat spatial); crop the valid conv
    # region.  TODO(synk): fuse this crop into the downstream consumer -- at
    # this size the standalone slice costs about as much as the conv itself.
    return out_flat.reshape(N, Cout, H, W)[:, :, :Hout, :Wout]


if __name__ == "__main__":
    key = jax.random.PRNGKey(0)
    k_img, k_w, k_b = jax.random.split(key, 3)

    # Small shapes consistent with the module: batch=2, Cin=3, spatial=16.
    N, Cin, H, W = 2, 3, 16, 16
    Cout, KH, KW = 8, 3, 3

    img = jax.random.normal(k_img, (N, Cin, H, W), dtype=jnp.float32)
    weight = jax.random.normal(k_w, (Cout, Cin, KH, KW), dtype=jnp.float32) * 0.1
    bias = jax.random.normal(k_b, (Cout,), dtype=jnp.float32) * 0.1

    out = c1_forward(img, weight, bias)
    out = jax.block_until_ready(out)

    # Reference check against XLA's conv (same semantics as PyTorch NCHW conv).
    ref = jax.lax.conv_general_dilated(
        img, weight, window_strides=(1, 1), padding="VALID",
        dimension_numbers=("NCHW", "OIHW", "NCHW"))
    ref = jnp.maximum(ref + bias.reshape(1, Cout, 1, 1), 0.0)
    assert out.shape == (N, Cout, H - 2, W - 2)
    assert jnp.allclose(out, ref, atol=1e-4, rtol=1e-4)

    print("KERNEL_OK")
</pallas_src>

<mosaic_0001>
module attributes {stable_mosaic.version = 11 : i64} {
  func.func @_conv3x3_relu_kernel(%arg0: i32, %arg1: memref<1x3x384xf32, #tpu.memory_space<vmem>>, %arg2: memref<8x27xf32, #tpu.memory_space<vmem>>, %arg3: memref<8x256xf32, #tpu.memory_space<vmem>>, %arg4: memref<1x8x256xf32, #tpu.memory_space<vmem>>) attributes {dimension_semantics = [#tpu.dimension_semantics<parallel>], iteration_bounds = array<i64: 2>, scalar_prefetch = 0 : i64, scratch_operands = 0 : i64, tpu.core_type = #tpu.core_type<tc>, window_params = [{transform_indices = @transform_0, window_bounds = array<i64: 1, 3, 384>}, {pipeline_mode = #tpu.pipeline_mode<synchronous>, transform_indices = @transform_1, window_bounds = array<i64: 8, 27>}, {pipeline_mode = #tpu.pipeline_mode<synchronous>, transform_indices = @transform_2, window_bounds = array<i64: 8, 256>}, {transform_indices = @transform_3, window_bounds = array<i64: 1, 8, 256>}]} {
    %c0 = arith.constant 0 : index
    %c0_0 = arith.constant 0 : index
    %0 = vector.load %arg3[%c0, %c0_0] : memref<8x256xf32, #tpu.memory_space<vmem>>, vector<8x256xf32>
    %c0_1 = arith.constant 0 : index
    %c0_2 = arith.constant 0 : index
    %c0_3 = arith.constant 0 : index
    %1 = vector.load %arg1[%c0_1, %c0_2, %c0_3] : memref<1x3x384xf32, #tpu.memory_space<vmem>>, vector<1x3x256xf32>
    %2 = vector.shape_cast %1 : vector<1x3x256xf32> to vector<3x256xf32>
    %c0_4 = arith.constant 0 : index
    %c0_5 = arith.constant 0 : index
    %3 = vector.load %arg2[%c0_4, %c0_5] : memref<8x27xf32, #tpu.memory_space<vmem>>, vector<8x3xf32>
    %cst = arith.constant dense<0.000000e+00> : vector<8x256xf32>
    %4 = tpu.matmul %3, %2, %cst {dimension_numbers = #tpu.dot_dimension_numbers<[1], [0], [0], [1], [0, 0, 1, 1], [], []>} : vector<8x3xf32>, vector<3x256xf32>, vector<8x256xf32> -> vector<8x256xf32>
    %5 = arith.addf %0, %4 : vector<8x256xf32>
    %c0_6 = arith.constant 0 : index
    %c0_7 = arith.constant 0 : index
    %c1 = arith.constant 1 : index
    %6 = vector.load %arg1[%c0_6, %c0_7, %c1] : memref<1x3x384xf32, #tpu.memory_space<vmem>>, vector<1x3x256xf32>
    %7 = vector.shape_cast %6 : vector<1x3x256xf32> to vector<3x256xf32>
    %c0_8 = arith.constant 0 : index
    %c3 = arith.constant 3 : index
    %8 = vector.load %arg2[%c0_8, %c3] : memref<8x27xf32, #tpu.memory_space<vmem>>, vector<8x3xf32>
    %cst_9 = arith.constant dense<0.000000e+00> : vector<8x256xf32>
    %9 = tpu.matmul %8, %7, %cst_9 {dimension_numbers = #tpu.dot_dimension_numbers<[1], [0], [0], [1], [0, 0, 1, 1], [], []>} : vector<8x3xf32>, vector<3x256xf32>, vector<8x256xf32> -> vector<8x256xf32>
    %10 = arith.addf %5, %9 : vector<8x256xf32>
    %c0_10 = arith.constant 0 : index
    %c0_11 = arith.constant 0 : index
    %c2 = arith.constant 2 : index
    %11 = vector.load %arg1[%c0_10, %c0_11, %c2] : memref<1x3x384xf32, #tpu.memory_space<vmem>>, vector<1x3x256xf32>
    %12 = vector.shape_cast %11 : vector<1x3x256xf32> to vector<3x256xf32>
    %c0_12 = arith.constant 0 : index
    %c6 = arith.constant 6 : index
    %13 = vector.load %arg2[%c0_12, %c6] : memref<8x27xf32, #tpu.memory_space<vmem>>, vector<8x3xf32>
    %cst_13 = arith.constant dense<0.000000e+00> : vector<8x256xf32>
    %14 = tpu.matmul %13, %12, %cst_13 {dimension_numbers = #tpu.dot_dimension_numbers<[1], [0], [0], [1], [0, 0, 1, 1], [], []>} : vector<8x3xf32>, vector<3x256xf32>, vector<8x256xf32> -> vector<8x256xf32>
    %15 = arith.addf %10, %14 : vector<8x256xf32>
    %c0_14 = arith.constant 0 : index
    %c0_15 = arith.constant 0 : index
    %c16 = arith.constant 16 : index
    %16 = vector.load %arg1[%c0_14, %c0_15, %c16] : memref<1x3x384xf32, #tpu.memory_space<vmem>>, vector<1x3x256xf32>
    %17 = vector.shape_cast %16 : vector<1x3x256xf32> to vector<3x256xf32>
    %c0_16 = arith.constant 0 : index
    %c9 = arith.constant 9 : index
    %18 = vector.load %arg2[%c0_16, %c9] : memref<8x27xf32, #tpu.memory_space<vmem>>, vector<8x3xf32>
    %cst_17 = arith.constant dense<0.000000e+00> : vector<8x256xf32>
    %19 = tpu.matmul %18, %17, %cst_17 {dimension_numbers = #tpu.dot_dimension_numbers<[1], [0], [0], [1], [0, 0, 1, 1], [], []>} : vector<8x3xf32>, vector<3x256xf32>, vector<8x256xf32> -> vector<8x256xf32>
    %20 = arith.addf %15, %19 : vector<8x256xf32>
    %c0_18 = arith.constant 0 : index
    %c0_19 = arith.constant 0 : index
    %c17 = arith.constant 17 : index
    %21 = vector.load %arg1[%c0_18, %c0_19, %c17] : memref<1x3x384xf32, #tpu.memory_space<vmem>>, vector<1x3x256xf32>
    %22 = vector.shape_cast %21 : vector<1x3x256xf32> to vector<3x256xf32>
    %c0_20 = arith.constant 0 : index
    %c12 = arith.constant 12 : index
    %23 = vector.load %arg2[%c0_20, %c12] : memref<8x27xf32, #tpu.memory_space<vmem>>, vector<8x3xf32>
    %cst_21 = arith.constant dense<0.000000e+00> : vector<8x256xf32>
    %24 = tpu.matmul %23, %22, %cst_21 {dimension_numbers = #tpu.dot_dimension_numbers<[1], [0], [0], [1], [0, 0, 1, 1], [], []>} : vector<8x3xf32>, vector<3x256xf32>, vector<8x256xf32> -> vector<8x256xf32>
    %25 = arith.addf %20, %24 : vector<8x256xf32>
    %c0_22 = arith.constant 0 : index
    %c0_23 = arith.constant 0 : index
    %c18 = arith.constant 18 : index
    %26 = vector.load %arg1[%c0_22, %c0_23, %c18] : memref<1x3x384xf32, #tpu.memory_space<vmem>>, vector<1x3x256xf32>
    %27 = vector.shape_cast %26 : vector<1x3x256xf32> to vector<3x256xf32>
    %c0_24 = arith.constant 0 : index
    %c15 = arith.constant 15 : index
    %28 = vector.load %arg2[%c0_24, %c15] : memref<8x27xf32, #tpu.memory_space<vmem>>, vector<8x3xf32>
    %cst_25 = arith.constant dense<0.000000e+00> : vector<8x256xf32>
    %29 = tpu.matmul %28, %27, %cst_25 {dimension_numbers = #tpu.dot_dimension_numbers<[1], [0], [0], [1], [0, 0, 1, 1], [], []>} : vector<8x3xf32>, vector<3x256xf32>, vector<8x256xf32> -> vector<8x256xf32>
    %30 = arith.addf %25, %29 : vector<8x256xf32>
    %c0_26 = arith.constant 0 : index
    %c0_27 = arith.constant 0 : index
    %c32 = arith.constant 32 : index
    %31 = vector.load %arg1[%c0_26, %c0_27, %c32] : memref<1x3x384xf32, #tpu.memory_space<vmem>>, vector<1x3x256xf32>
    %32 = vector.shape_cast %31 : vector<1x3x256xf32> to vector<3x256xf32>
    %c0_28 = arith.constant 0 : index
    %c18_29 = arith.constant 18 : index
    %33 = vector.load %arg2[%c0_28, %c18_29] : memref<8x27xf32, #tpu.memory_space<vmem>>, vector<8x3xf32>
    %cst_30 = arith.constant dense<0.000000e+00> : vector<8x256xf32>
    %34 = tpu.matmul %33, %32, %cst_30 {dimension_numbers = #tpu.dot_dimension_numbers<[1], [0], [0], [1], [0, 0, 1, 1], [], []>} : vector<8x3xf32>, vector<3x256xf32>, vector<8x256xf32> -> vector<8x256xf32>
    %35 = arith.addf %30, %34 : vector<8x256xf32>
    %c0_31 = arith.constant 0 : index
    %c0_32 = arith.constant 0 : index
    %c33 = arith.constant 33 : index
    %36 = vector.load %arg1[%c0_31, %c0_32, %c33] : memref<1x3x384xf32, #tpu.memory_space<vmem>>, vector<1x3x256xf32>
    %37 = vector.shape_cast %36 : vector<1x3x256xf32> to vector<3x256xf32>
    %c0_33 = arith.constant 0 : index
    %c21 = arith.constant 21 : index
    %38 = vector.load %arg2[%c0_33, %c21] : memref<8x27xf32, #tpu.memory_space<vmem>>, vector<8x3xf32>
    %cst_34 = arith.constant dense<0.000000e+00> : vector<8x256xf32>
    %39 = tpu.matmul %38, %37, %cst_34 {dimension_numbers = #tpu.dot_dimension_numbers<[1], [0], [0], [1], [0, 0, 1, 1], [], []>} : vector<8x3xf32>, vector<3x256xf32>, vector<8x256xf32> -> vector<8x256xf32>
    %40 = arith.addf %35, %39 : vector<8x256xf32>
    %c0_35 = arith.constant 0 : index
    %c0_36 = arith.constant 0 : index
    %c34 = arith.constant 34 : index
    %41 = vector.load %arg1[%c0_35, %c0_36, %c34] : memref<1x3x384xf32, #tpu.memory_space<vmem>>, vector<1x3x256xf32>
    %42 = vector.shape_cast %41 : vector<1x3x256xf32> to vector<3x256xf32>
    %c0_37 = arith.constant 0 : index
    %c24 = arith.constant 24 : index
    %43 = vector.load %arg2[%c0_37, %c24] : memref<8x27xf32, #tpu.memory_space<vmem>>, vector<8x3xf32>
    %cst_38 = arith.constant dense<0.000000e+00> : vector<8x256xf32>
    %44 = tpu.matmul %43, %42, %cst_38 {dimension_numbers = #tpu.dot_dimension_numbers<[1], [0], [0], [1], [0, 0, 1, 1], [], []>} : vector<8x3xf32>, vector<3x256xf32>, vector<8x256xf32> -> vector<8x256xf32>
    %45 = arith.addf %40, %44 : vector<8x256xf32>
    %cst_39 = arith.constant 0.000000e+00 : f32
    %46 = vector.broadcast %cst_39 : f32 to vector<8x256xf32>
    %47 = arith.maximumf %45, %46 : vector<8x256xf32>
    %c0_40 = arith.constant 0 : index
    %c0_41 = arith.constant 0 : index
    %c0_42 = arith.constant 0 : index
    %48 = vector.load %arg4[%c0_40, %c0_41, %c0_42] : memref<1x8x256xf32, #tpu.memory_space<vmem>>, vector<1x8x256xf32>
    %49 = vector.shape_cast %48 : vector<1x8x256xf32> to vector<8x256xf32>
    %50 = vector.shape_cast %47 : vector<8x256xf32> to vector<1x8x256xf32>
    tpu.vector_store %arg4[%c0_40, %c0_41, %c0_42], %50 {strides = array<i32>} : memref<1x8x256xf32, #tpu.memory_space<vmem>>, vector<1x8x256xf32>,
    return
  }
  func.func @transform_0(%arg0: i32) -> (i32, i32, i32) {
    %c0_i32 = arith.constant 0 : i32
    %c0_i32_0 = arith.constant 0 : i32
    %c0_i32_1 = arith.constant 0 : i32
    return %arg0, %c0_i32, %c0_i32_0 : i32, i32, i32
  }
  func.func @transform_1(%arg0: i32) -> (i32, i32) {
    %c0_i32 = arith.constant 0 : i32
    %c0_i32_0 = arith.constant 0 : i32
    %c0_i32_1 = arith.constant 0 : i32
    return %c0_i32, %c0_i32_0 : i32, i32
  }
  func.func @transform_2(%arg0: i32) -> (i32, i32) {
    %c0_i32 = arith.constant 0 : i32
    %c0_i32_0 = arith.constant 0 : i32
    %c0_i32_1 = arith.constant 0 : i32
    return %c0_i32, %c0_i32_0 : i32, i32
  }
  func.func @transform_3(%arg0: i32) -> (i32, i32, i32) {
    %c0_i32 = arith.constant 0 : i32
    %c0_i32_0 = arith.constant 0 : i32
    %c0_i32_1 = arith.constant 0 : i32
    return %arg0, %c0_i32, %c0_i32_0 : i32, i32, i32
  }
}

</mosaic_0001>

<bundles_post_ra>
// kernel: c1_forward.1
= control target key start
LH: loop header
LB: loop body
LE: loop exit
PB: predicated region body
PF: predicated region fallthrough
CT: control target
= control target key end

     0   :  { %s971_s12 = smov 0   ;;  %s1088_s0 = inlined_call_operand.vmem [shape: f32[2,3,384], index: 0, kind: input, shape index: {}]   ;;  %s1089_s1 = inlined_call_operand.vmem [shape: f32[8,27], index: 1, kind: input, shape index: {}]   ;;  %s1090_s2 = inlined_call_operand.vmem [shape: f32[8,256], index: 2, kind: input, shape index: {}]   ;;  %s1091_s3 = inlined_call_operand.vmem [shape: f32[2,8,256], index: 3, kind: output, shape index: {}]  }
   0x1 LB: > { %s857_s13 = sadd.s32 4294967295, %s934_s12   ;;  %p861_p0 = scmp.ge.s32.totalorder %s934_s12, 1  ;;  %s934_s12 = sphi %s971_s12, %s13_s12  }
   0x2   : > { %p137_p1 = scmp.lt.s32.totalorder %s934_s12, 3 }
   0x4   : > { %p138_p2 = pnand %p861_p0, %p137_p1 }
   0x5   : > { %s936_s16 = smov (!%p138_p2), 125   ;;  %s937_s17 = smov (!%p138_p2), 116  }
   0x6   : > { %141 = sbr.rel (%p138_p2) target bundleno = 355 (0x163), region = 32  ;;  %p161_p3 = scmp.lt.s32.totalorder (!%p138_p2), %s857_s13, 1 }
   0x7   : > { %s938_s18 = smov (!%p138_p2), 119   ;;  %s939_s23 = smov (!%p138_p2), 122  }
   0x8   : > { %s940_s24 = smov (!%p138_p2), 110   ;;  %s941_s25 = smov (!%p138_p2), 127  }
   0x9   : > { %s942_s26 = smov (!%p138_p2), 113   ;;  %s943_s27 = smov (!%p138_p2), 126  }
   0xa   : > { %s944_s28 = smov (!%p138_p2), 112   ;;  %s945_s29 = smov (!%p138_p2), 111  }
   0xb   : > { %v982_v0 = vld [vmem:[%s1089_s1] sm:$0xff]  ;;  %s1093_s13 = smov (!%p161_p3, %s857_s13), 1  ;;  %s946_s30 = smov 107   ;;  %vm183_vm0 = vcmask 1042432   ;;  %vm179_vm1 = vcmask 23552   ;;  %vm321_vm2 = vcmask 1031168  }
   0xc   : > { %234 = vrot.lane.b32.xlu1 %v982_v0, %s936_s16  ;;  %447 = vrot.lane.b32.xlu0 %v982_v0, %s937_s17  ;;  %s904_s19 = smul.u32 12, %s1093_s13  ;;  %s947_s4 = smov 96   ;;  %vm250_vm3 = vcmask 1039360   ;;  %vm392_vm4 = vcmask 916480   ;;  %vm463_vm5 = vcmask 908288   ;;  %vm534_vm6 = vcmask 900096  }
   0xd   : > { %376 = vrot.lane.b32.xlu2 %v982_v0, %s938_s18  ;;  %s948_s5 = smov 95   ;;  %s949_s6 = smov 94   ;;  %vm605_vm7 = vcmask 785408   ;;  %vm747_vm8 = vcmask 769024   ;;  %vm676_vm9 = vcmask 777216  }
   0xe   : > { %s993_s22 = scalar_lea.vmem %s1088_s0, %s904_s19  ;;  %s950_s7 = smov 104  }
   0xf   : > { %v231_v1 = vld [vmem:[%s993_s22 + $0x8] sm:$0x7]  ;;  %v173_v2 = vld [vmem:[%s993_s22] sm:$0x77]  ;;  %s903_s14 = sshll.u32 %s1093_s13, 4 }
  0x10   : > { %240 = vst [vmem:[#allocation1 + $0x10] ss:$2 sm:$0xff] %v231_v1  ;;  %v302_v3 = vld [vmem:[%s993_s22 + $0x8] sm:$0x7]  ;;  %v230_v5 = vld [vmem:[%s993_s22] sm:$0x77]  ;;  %s170_s17 = scalar_lea.vmem %s1091_s3, %s903_s14 }
  0x11   : > { %176 = vst [vmem:[#allocation1] ss:$2 sm:$0xff] %v173_v2  ;;  %v373_v8 = vld [vmem:[%s993_s22 + $0x8] sm:$0x7]  ;;  %v301_v9 = vld [vmem:[%s993_s22] sm:$0x77] }
  0x12   : > { %v444_v13 = vld [vmem:[%s993_s22 + $0x8] sm:$0x7]  ;;  %v372_v14 = vld [vmem:[%s993_s22] sm:$0x77] }
  0x13   : > { %v515_v18 = vld [vmem:[%s993_s22 + $0x8] sm:$0x7]  ;;  %v443_v19 = vld [vmem:[%s993_s22] sm:$0x77] }
  0x14   : > { %305 = vrot.lane.b32.xlu1 %v982_v0, %s939_s23  ;;  %v586_v23 = vld [vmem:[%s993_s22 + $0x8] sm:$0x7]  ;;  %v514_v24 = vld [vmem:[%s993_s22] sm:$0x77] }
  0x15   : > { %589 = vrot.lane.b32.xlu2 %v982_v0, %s940_s24  ;;  %v657_v28 = vld [vmem:[%s993_s22 + $0x8] sm:$0x7]  ;;  %v585_v30 = vld [vmem:[%s993_s22] sm:$0x77] }
  0x16   : > { %v728_v33 = vld [vmem:[%s993_s22 + $0x8] sm:$0x7]  ;;  %v656_v35 = vld [vmem:[%s993_s22] sm:$0x77] }
  0x17   : > { %v243_v4 = vld.sshfl [vmem:[#allocation1 + $0x10] sm:$0xff pattern:$0x75316420]  ;;  %v727_v38 = vld [vmem:[%s993_s22] sm:$0x77] }
  0x18   : > { %311 = vst [vmem:[#allocation1 + $0x10] ss:$2 sm:$0xff] %v302_v3  ;;  %v1002_v6 = vld.sshfl [vmem:[#allocation1] sm:$0xff pattern:$0x75316420] }
  0x19   : > { %v1004_v7 = vld.sshfl [vmem:[#allocation1 + $0x8] sm:$0xff pattern:$0x75316420]  ;;  %865 = vmatpush.msk.msra.mxu0 %vm183_vm0, %v1002_v6 }
  0x1a   : > { %238 = vst [vmem:[#allocation1] ss:$2 sm:$0xff] %v230_v5  ;;  %867 = vmatpush.msk.msra.mxu1 %vm183_vm0, %v1004_v7  ;;  %866 = vmatmul.msk.f32.vlgmr.msra.gmra.mxu0 %vm179_vm1, %v982_v0 }
  0x1b   : > { %868 = vmatmul.msk.f32.vlgmr.msra.gmra.mxu1 %vm179_vm1, %v982_v0 }
  0x1c   : > { %248 = vrot.lane.b32.xlu1 %v243_v4, %s941_s25 }
  0x1f   : > { %v314_v10 = vld.sshfl [vmem:[#allocation1 + $0x10] sm:$0xff pattern:$0x75316420] }
  0x20   : > { %382 = vst [vmem:[#allocation1 + $0x10] ss:$2 sm:$0xff] %v373_v8 }
  0x21   : > { %v241_v11 = vld.sshfl [vmem:[#allocation1] sm:$0xff pattern:$0x75316420]  ;;  %v242_v12 = vld.sshfl [vmem:[#allocation1 + $0x8] sm:$0xff pattern:$0x75316420] }
  0x22   : > { %244 = vrot.lane.b32.xlu0 %v241_v11, %s941_s25  ;;  %309 = vst [vmem:[#allocation1] ss:$2 sm:$0xff] %v301_v9 }
  0x24   : > { %518 = vrot.lane.b32.xlu1 %v982_v0, %s942_s26 }
  0x27   : > { %v385_v15 = vld.sshfl [vmem:[#allocation1 + $0x10] sm:$0xff pattern:$0x75316420] }
  0x28   : > { %453 = vst [vmem:[#allocation1 + $0x10] ss:$2 sm:$0xff] %v444_v13 }
  0x29   : > { %v312_v16 = vld.sshfl [vmem:[#allocation1] sm:$0xff pattern:$0x75316420]  ;;  %v313_v17 = vld.sshfl [vmem:[#allocation1 + $0x8] sm:$0xff pattern:$0x75316420] }
  0x2a   : > { %246 = vrot.lane.b32.xlu0 %v242_v12, %s941_s25  ;;  %380 = vst [vmem:[#allocation1] ss:$2 sm:$0xff] %v372_v14  ;;  %315 = vrot.lane.b32.xlu2 %v312_v16, %s943_s27 }
  0x2f   : > { %v456_v20 = vld.sshfl [vmem:[#allocation1 + $0x10] sm:$0xff pattern:$0x75316420] }
  0x30   : > { %524 = vst [vmem:[#allocation1 + $0x10] ss:$2 sm:$0xff] %v515_v18 }
  0x31   : > { %v383_v21 = vld.sshfl [vmem:[#allocation1] sm:$0xff pattern:$0x75316420]  ;;  %v384_v22 = vld.sshfl [vmem:[#allocation1 + $0x8] sm:$0xff pattern:$0x75316420] }
  0x32   : > { %319 = vrot.lane.b32.xlu0 %v314_v10, %s943_s27  ;;  %386 = vrot.lane.b32.xlu1 %v383_v21, %s944_s28  ;;  %451 = vst [vmem:[#allocation1] ss:$2 sm:$0xff] %v443_v19 }
  0x33   : > { %317 = vrot.lane.b32.xlu2 %v313_v17, %s943_s27 }
  0x37   : > { %v527_v25 = vld.sshfl [vmem:[#allocation1 + $0x10] sm:$0xff pattern:$0x75316420] }
  0x38   : > { %595 = vst [vmem:[#allocation1 + $0x10] ss:$2 sm:$0xff] %v586_v23 }
  0x39   : > { %v454_v26 = vld.sshfl [vmem:[#allocation1] sm:$0xff pattern:$0x75316420]  ;;  %v455_v27 = vld.sshfl [vmem:[#allocation1 + $0x8] sm:$0xff pattern:$0x75316420] }
  0x3a   : > { %390 = vrot.lane.b32.xlu0 %v385_v15, %s944_s28  ;;  %459 = vrot.lane.b32.xlu1 %v455_v27, %s945_s29  ;;  %522 = vst [vmem:[#allocation1] ss:$2 sm:$0xff] %v514_v24 }
  0x3b   : > { %388 = vrot.lane.b32.xlu2 %v384_v22, %s944_s28 }
  0x3f   : > { %v598_v29 = vld.sshfl [vmem:[#allocation1 + $0x10] sm:$0xff pattern:$0x75316420] }
  0x40   : > { %666 = vst [vmem:[#allocation1 + $0x10] ss:$2 sm:$0xff] %v657_v28 }
  0x41   : > { %v526_v31 = vld.sshfl [vmem:[#allocation1 + $0x8] sm:$0xff pattern:$0x75316420]  ;;  %v525_v32 = vld.sshfl [vmem:[#allocation1] sm:$0xff pattern:$0x75316420] }
  0x42   : > { %660 = vrot.lane.b32.xlu0 %v982_v0, %s946_s30  ;;  %530 = vrot.lane.b32.xlu1 %v526_v31, %s940_s24  ;;  %593 = vst [vmem:[#allocation1] ss:$2 sm:$0xff] %v585_v30 }
  0x43   : > { %461 = vrot.lane.b32.xlu2 %v456_v20, %s945_s29 }
  0x47   : > { %v669_v34 = vld.sshfl [vmem:[#allocation1 + $0x10] sm:$0xff pattern:$0x75316420] }
  0x48   : > { %737 = vst [vmem:[#allocation1 + $0x10] ss:$2 sm:$0xff] %v728_v33 }
  0x49   : > { %v597_v36 = vld.sshfl [vmem:[#allocation1 + $0x8] sm:$0xff pattern:$0x75316420]  ;;  %v596_v37 = vld.sshfl [vmem:[#allocation1] sm:$0xff pattern:$0x75316420] }
  0x4a   : > { %457 = vrot.lane.b32.xlu0 %v454_v26, %s945_s29  ;;  %603 = vrot.lane.b32.xlu1 %v598_v29, %s947_s4  ;;  %664 = vst [vmem:[#allocation1] ss:$2 sm:$0xff] %v656_v35  ;;  %v172_v35 = vld [vmem:[%s1090_s2 + $0x8] sm:$0xff] }
  0x4b   : > { %532 = vrot.lane.b32.xlu2 %v527_v25, %s940_s24 }
  0x4f   : > { %v740_v43 = vld.sshfl [vmem:[#allocation1 + $0x10] sm:$0xff pattern:$0x75316420] }
  0x51   : > { %v668_v39 = vld.sshfl [vmem:[#allocation1 + $0x8] sm:$0xff pattern:$0x75316420]  ;;  %v667_v40 = vld.sshfl [vmem:[#allocation1] sm:$0xff pattern:$0x75316420] }
  0x52   : > { %528 = vrot.lane.b32.xlu0 %v525_v32, %s940_s24  ;;  %674 = vrot.lane.b32.xlu1 %v669_v34, %s948_s5  ;;  %735 = vst [vmem:[#allocation1] ss:$2 sm:$0xff] %v727_v38  ;;  %v171_v34 = vld [vmem:[%s1090_s2] sm:$0xff] }
  0x53   : > { %599 = vrot.lane.b32.xlu2 %v596_v37, %s947_s4 }
  0x59   : > { %v738_v41 = vld.sshfl [vmem:[#allocation1] sm:$0xff pattern:$0x75316420]  ;;  %v739_v42 = vld.sshfl [vmem:[#allocation1 + $0x8] sm:$0xff pattern:$0x75316420] }
  0x5a   : > { %601 = vrot.lane.b32.xlu0 %v597_v36, %s947_s4  ;;  %741 = vrot.lane.b32.xlu1 %v738_v41, %s949_s6 }
  0x5b   : > { %670 = vrot.lane.b32.xlu2 %v667_v40, %s948_s5 }
  0x62   : > { %672 = vrot.lane.b32.xlu0 %v668_v39, %s948_s5  ;;  %731 = vrot.lane.b32.xlu1 %v982_v0, %s950_s7 }
  0x63   : > { %743 = vrot.lane.b32.xlu2 %v739_v42, %s949_s6 }
  0x67   : > { %v377_v44 = vpop.permute.xlu2 %376 }
  0x6a   : > { %745 = vrot.lane.b32.xlu0 %v740_v43, %s949_s6 }
  0x6f   : > { %v1033_v45 = vpop.permute.xlu2 %589 }
  0x7e   : > { %v235_v46 = vpop.permute.xlu1 %234  ;;  %v448_v49 = vpop.permute.xlu0 %447 }
  0x84   : > { %v316_v47 = vpop.permute.xlu2 %315 }
  0x86   : > { %v306_v48 = vpop.permute.xlu1 %305 }
  0x8d   : > { %v318_v50 = vpop.permute.xlu2 %317 }
  0x8e   : > { %v322_v51 = vsel %vm321_vm2, %v316_v47, %v318_v50  ;;  %v249_v52 = vpop.permute.xlu1 %248 }
  0x8f   : > { %873 = vmatpush.msk.msrb.mxu0 %vm183_vm0, %v322_v51 }
  0x90   : > { %874 = vmatmul.msk.f32.vlgmr.msrb.gmra.mxu0 %vm179_vm1, %v306_v48 }
  0x94   : > { %v245_v53 = vpop.permute.xlu0 %244 }
  0x95   : > { %v389_v54 = vpop.permute.xlu2 %388 }
  0x96   : > { %v519_v55 = vpop.permute.xlu1 %518 }
  0x97   : > { %v205_v28 = vpop.f32.mrf.mxu0 }
  0x98   : > { %v225_v29 = vpop.f32.mrf.mxu1  ;;  %v228_v36 = vadd.f32 %v205_v28, %v171_v34 }
  0x99   : > { %v229_v37 = vadd.f32 %v225_v29, %v172_v35 }
  0x9c   : > { %v247_v56 = vpop.permute.xlu0 %246 }
  0x9d   : > { %v251_v57 = vsel %vm250_vm3, %v245_v53, %v247_v56  ;;  %v252_v58 = vsel %vm250_vm3, %v247_v56, %v249_v52  ;;  %v462_v59 = vpop.permute.xlu2 %461 }
  0x9e   : > { %869 = vmatpush.msk.msra.mxu2 %vm183_vm0, %v251_v57  ;;  %871 = vmatpush.msk.msra.mxu3 %vm183_vm0, %v252_v58 }
  0x9f   : > { %870 = vmatmul.msk.f32.vlgmr.msra.gmra.mxu2 %vm179_vm1, %v235_v46  ;;  %872 = vmatmul.msk.f32.vlgmr.msra.gmra.mxu3 %vm179_vm1, %v235_v46 }
  0xa4   : > { %v320_v60 = vpop.permute.xlu0 %319  ;;  %v387_v61 = vpop.permute.xlu1 %386 }
  0xa5   : > { %v323_v62 = vsel %vm321_vm2, %v318_v50, %v320_v60  ;;  %v393_v63 = vsel %vm392_vm4, %v387_v61, %v389_v54  ;;  %v533_v4 = vpop.permute.xlu2 %532 }
  0xa6   : > { %875 = vmatpush.msk.msrb.mxu1 %vm183_vm0, %v323_v62  ;;  %877 = vmatpush.msk.msrb.mxu2 %vm183_vm0, %v393_v63 }
  0xa7   : > { %876 = vmatmul.msk.f32.vlgmr.msrb.gmra.mxu1 %vm179_vm1, %v306_v48  ;;  %878 = vmatmul.msk.f32.vlgmr.msrb.gmra.mxu2 %vm179_vm1, %v377_v44 }
  0xac   : > { %v391_v0 = vpop.permute.xlu0 %390  ;;  %v460_v1 = vpop.permute.xlu1 %459 }
  0xad   : > { %v465_v2 = vsel %vm463_vm5, %v460_v1, %v462_v59  ;;  %v394_v3 = vsel %vm392_vm4, %v389_v54, %v391_v0  ;;  %v600_v8 = vpop.permute.xlu2 %599 }
  0xae   : > { %879 = vmatpush.msk.msrb.mxu3 %vm183_vm0, %v394_v3  ;;  %883 = vmatpush.msk.msra.mxu1 %vm183_vm0, %v465_v2 }
  0xaf   : > { %880 = vmatmul.msk.f32.vlgmr.msrb.gmra.mxu3 %vm179_vm1, %v377_v44  ;;  %884 = vmatmul.msk.f32.vlgmr.msra.gmra.mxu1 %vm179_vm1, %v448_v49 }
  0xb4   : > { %v661_v5 = vpop.permute.xlu0 %660  ;;  %v531_v6 = vpop.permute.xlu1 %530 }
  0xb5   : > { %v536_v7 = vsel %vm534_vm6, %v531_v6, %v533_v4  ;;  %v671_v12 = vpop.permute.xlu2 %670 }
  0xb6   : > { %887 = vmatpush.msk.msra.mxu3 %vm183_vm0, %v536_v7 }
  0xb7   : > { %888 = vmatmul.msk.f32.vlgmr.msra.gmra.mxu3 %vm179_vm1, %v519_v55 }
  0xbc   : > { %v458_v9 = vpop.permute.xlu0 %457  ;;  %v604_v10 = vpop.permute.xlu1 %603 }
  0xbd   : > { %v464_v11 = vsel %vm463_vm5, %v458_v9, %v460_v1  ;;  %v744_v16 = vpop.permute.xlu2 %743 }
  0xbe   : > { %881 = vmatpush.msk.msra.mxu0 %vm183_vm0, %v464_v11 }
  0xbf   : > { %882 = vmatmul.msk.f32.vlgmr.msra.gmra.mxu0 %vm179_vm1, %v448_v49 }
  0xc4   : > { %v529_v13 = vpop.permute.xlu0 %528  ;;  %v675_v14 = vpop.permute.xlu1 %674 }
  0xc5   : > { %v535_v15 = vsel %vm534_vm6, %v529_v13, %v531_v6 }
  0xc6   : > { %885 = vmatpush.msk.msra.mxu2 %vm183_vm0, %v535_v15 }
  0xc7   : > { %886 = vmatmul.msk.f32.vlgmr.msra.gmra.mxu2 %vm179_vm1, %v519_v55 }
  0xcc   : > { %v602_v17 = vpop.permute.xlu0 %601  ;;  %v742_v18 = vpop.permute.xlu1 %741 }
  0xcd   : > { %v607_v19 = vsel %vm605_vm7, %v602_v17, %v604_v10  ;;  %v606_v20 = vsel %vm605_vm7, %v600_v8, %v602_v17  ;;  %v748_v21 = vsel %vm747_vm8, %v742_v18, %v744_v16 }
  0xce   : > { %889 = vmatpush.msk.msrb.mxu0 %vm183_vm0, %v606_v20  ;;  %891 = vmatpush.msk.msrb.mxu1 %vm183_vm0, %v607_v19 }
  0xcf   : > { %890 = vmatmul.msk.f32.vlgmr.msrb.gmra.mxu0 %vm179_vm1, %v1033_v45  ;;  %892 = vmatmul.msk.f32.vlgmr.msrb.gmra.mxu1 %vm179_vm1, %v1033_v45 }
  0xd0   : > { %897 = vmatpush.msk.msra.mxu0 %vm183_vm0, %v748_v21 }
  0xd4   : > { %v673_v22 = vpop.permute.xlu0 %672  ;;  %v732_v25 = vpop.permute.xlu1 %731 }
  0xd5   : > { %v678_v23 = vsel %vm676_vm9, %v673_v22, %v675_v14  ;;  %v677_v24 = vsel %vm676_vm9, %v671_v12, %v673_v22 }
  0xd6   : > { %893 = vmatpush.msk.msrb.mxu2 %vm183_vm0, %v677_v24  ;;  %895 = vmatpush.msk.msrb.mxu3 %vm183_vm0, %v678_v23 }
  0xd7   : > { %894 = vmatmul.msk.f32.vlgmr.msrb.gmra.mxu2 %vm179_vm1, %v661_v5  ;;  %896 = vmatmul.msk.f32.vlgmr.msrb.gmra.mxu3 %vm179_vm1, %v661_v5 }
  0xd8   : > { %898 = vmatmul.msk.f32.vlgmr.msra.gmra.mxu0 %vm179_vm1, %v732_v25 }
  0xdc   : > { %v746_v26 = vpop.permute.xlu0 %745 }
  0xdd   : > { %v749_v27 = vsel %vm747_vm8, %v744_v16, %v746_v26 }
  0xde   : > { %899 = vmatpush.msk.msra.mxu1 %vm183_vm0, %v749_v27 }
  0xdf   : > { %900 = vmatmul.msk.f32.vlgmr.msra.gmra.mxu1 %vm179_vm1, %v732_v25 }
 0x10d   : > { %v347_v32 = vpop.f32.mrf.mxu0 }
 0x122   : > { %v276_v30 = vpop.f32.mrf.mxu2  ;;  %v296_v31 = vpop.f32.mrf.mxu3 }
 0x123   : > { %v299_v41 = vadd.f32 %v276_v30, %v228_v36  ;;  %v300_v42 = vadd.f32 %v296_v31, %v229_v37 }
 0x124   : > { %v367_v33 = vpop.f32.mrf.mxu1 }
 0x125   : > { %v371_v44 = vadd.f32 %v367_v33, %v300_v42  ;;  %v370_v45 = vadd.f32 %v347_v32, %v299_v41 }
 0x12a   : > { %v418_v40 = vpop.f32.mrf.mxu2 }
 0x12b   : > { %v441_v46 = vadd.f32 %v418_v40, %v370_v45 }
 0x12c   : > { %v509_v43 = vpop.f32.mrf.mxu1 }
 0x132   : > { %v438_v38 = vpop.f32.mrf.mxu3 }
 0x133   : > { %v442_v47 = vadd.f32 %v438_v38, %v371_v44 }
 0x135   : > { %v513_v53 = vadd.f32 %v509_v43, %v442_v47 }
 0x13a   : > { %v580_v49 = vpop.f32.mrf.mxu3 }
 0x13b   : > { %v584_v55 = vadd.f32 %v580_v49, %v513_v53 }
 0x13c   : > { %v489_v39 = vpop.f32.mrf.mxu0 }
 0x13d   : > { %v512_v51 = vadd.f32 %v489_v39, %v441_v46 }
 0x14a   : > { %v560_v50 = vpop.f32.mrf.mxu2 }
 0x14b   : > { %v583_v54 = vadd.f32 %v560_v50, %v512_v51 }
 0x14c   : > { %v631_v48 = vpop.f32.mrf.mxu0  ;;  %v651_v52 = vpop.f32.mrf.mxu1 }
 0x14d   : > { %v654_v56 = vadd.f32 %v631_v48, %v583_v54  ;;  %v655_v57 = vadd.f32 %v651_v52, %v584_v55 }
 0x155   : > { %v773_v58 = vpop.f32.mrf.mxu0 }
 0x15a   : > { %v702_v59 = vpop.f32.mrf.mxu2  ;;  %v722_v60 = vpop.f32.mrf.mxu3 }
 0x15b   : > { %v725_v61 = vadd.f32 %v702_v59, %v654_v56  ;;  %v726_v62 = vadd.f32 %v722_v60, %v655_v57 }
 0x15c   : > { %v793_v63 = vpop.f32.mrf.mxu1 }
 0x15d   : > { %v796_v0 = vadd.f32 %v773_v58, %v725_v61  ;;  %v797_v1 = vadd.f32 %v793_v63, %v726_v62 }
 0x15f   : > { %v798_v2 = vmax.f32 %v796_v0, 0.0  ;;  %v799_v3 = vmax.f32 %v797_v1, 0.0 }
 0x161   : > { %800 = vst [vmem:[%s170_s17] sm:$0xff] %v798_v2 }
 0x162   : > { %801 = vst [vmem:[%s170_s17 + $0x8] sm:$0xff] %v799_v3 }
 0x163 PF: > { %s13_s12 = sadd.s32 1, %s934_s12  }
 0x164   : > { %p10_p4 = scmp.ge.s32.totalorder %s13_s12, 4  }
 0x166   :  { %12 = sbr.rel (!%p10_p4) target bundleno = 1 (0x1), region = 70 }

</bundles_post_ra>
